<compile_context>
chip_gen: v7x
topology: tpu7x:2x2x1
jax: 0.10.0
libtpu: 0.0.40
codegen_flags: <defaults>
</compile_context>

<pallas_src>
import numpy as np
import jax
import jax.numpy as jnp
from jax.experimental import pallas as pl
from jax.experimental.pallas import tpu as pltpu

LRELU_SLOPE = 0.2


def _lrelu(v):
    return jnp.where(v >= 0, v, LRELU_SLOPE * v)


# ---------------------------------------------------------------------------
# Kernel: one grid step == (one batch element, one time tile); all in VMEM.
# ---------------------------------------------------------------------------
def _make_res_block_kernel(tt, fuse_taps, has_sconv, mm_dtype):
    th = tt // 2

    def kernel(*refs):
        if has_sconv:
            (x_ref, halo_ref, w1_ref, b1_ref, w2_ref, b2_ref, ws_ref,
             o_ref, pool_scr) = refs
        else:
            (x_ref, halo_ref, w1_ref, b1_ref, w2_ref, b2_ref,
             o_ref, pool_scr) = refs
            ws_ref = None

        # channels-first tile from HBM -> channel-last working view (one XLU
        # transpose instead of a wrapper-side HBM transpose pass).
        x_cf = x_ref[0]                          # (Cin, tt) f32, time on lanes
        xt = jnp.transpose(x_cf)                 # (tt, Cin) channel-last
        halo = halo_ref[0, 0]                    # (2, Cin): [x[:,t0-1], x[:,t0+tt]] (0 at seq ends)

        # ---- shortcut: AvgPool1d(2), then optional weight-normed 1x1 conv ----
        pool_scr[...] = xt
        sc = 0.5 * (pool_scr[pl.ds(0, th, stride=2), :]
                    + pool_scr[pl.ds(1, th, stride=2), :])            # (th, Cin)
        if has_sconv:
            sc = jnp.dot(sc.astype(mm_dtype), ws_ref[...],
                         preferred_element_type=jnp.float32)          # (th, Cout)

        # ---- main: lrelu -> conv1(k=3, pad=1) -> avgpool -> lrelu -> conv2 ----
        # lrelu(0) == 0, so lrelu of the zero-masked halo matches zero padding.
        a_pad = jnp.concatenate(
            [_lrelu(halo[0:1, :]), _lrelu(xt), _lrelu(halo[1:2, :])], axis=0)  # (tt+2, Cin)

        if fuse_taps:
            a3 = jnp.concatenate(
                [a_pad[0:tt, :], a_pad[1:tt + 1, :], a_pad[2:tt + 2, :]],
                axis=1)                                               # (tt, 3*Cin)
            h = jnp.dot(a3.astype(mm_dtype), w1_ref[...],
                        preferred_element_type=jnp.float32)           # (tt, Cin)
        else:
            h = (jnp.dot(a_pad[0:tt, :].astype(mm_dtype), w1_ref[0],
                         preferred_element_type=jnp.float32)
                 + jnp.dot(a_pad[1:tt + 1, :].astype(mm_dtype), w1_ref[1],
                           preferred_element_type=jnp.float32)
                 + jnp.dot(a_pad[2:tt + 2, :].astype(mm_dtype), w1_ref[2],
                           preferred_element_type=jnp.float32))
        h = h + b1_ref[...]                                           # (tt, Cin)

        pool_scr[...] = h
        hp = 0.5 * (pool_scr[pl.ds(0, th, stride=2), :]
                    + pool_scr[pl.ds(1, th, stride=2), :])            # (th, Cin)
        hp = _lrelu(hp)
        y = jnp.dot(hp.astype(mm_dtype), w2_ref[...],
                    preferred_element_type=jnp.float32) + b2_ref[...]  # (th, Cout)

        # channels-first store: time stays on the lane axis -> lane-dense output
        o_ref[0] = jnp.transpose(y + sc)                              # (Cout, th)

    return kernel


# ---------------------------------------------------------------------------
# Wrapper: weight-norm reparam, tiny halo gather, single pallas_call.
# ---------------------------------------------------------------------------
def weight_norm_eff(v, g):
    """PyTorch nn.utils.weight_norm (dim=0): w = g * v / ||v||, norm over dims != 0."""
    norm = jnp.sqrt(jnp.sum(v * v, axis=(1, 2), keepdims=True))
    return v * (g.reshape(-1, 1, 1) / norm)


def _pick_time_tile(T):
    # Largest of {1024, 512, 256} that divides T (keeps tile and pooled tile
    # 128-aligned); whole T otherwise (full-dim blocks are always legal).
    for tt in (1024, 512, 256):
        if T % tt == 0 and T > tt:
            return tt
    return T


def _build_halos(x, nt, tt):
    """(B, nt, 2, Cin): per-tile left/right neighbour columns (zeros at sequence ends)."""
    B, C, T = x.shape
    li = np.maximum(np.arange(nt) * tt - 1, 0)
    ri = np.minimum((np.arange(nt) + 1) * tt, T - 1)
    lmask = jnp.asarray((np.arange(nt) > 0).astype(np.float32))[None, :, None]
    rmask = jnp.asarray((np.arange(nt) < nt - 1).astype(np.float32))[None, :, None]
    left = jnp.transpose(x[:, :, li], (0, 2, 1)) * lmask      # (B, nt, C)
    right = jnp.transpose(x[:, :, ri], (0, 2, 1)) * rmask     # (B, nt, C)
    return jnp.stack([left, right], axis=2)                   # (B, nt, 2, C)


def res_block_forward(x, params, dim_in, dim_out, *, time_tile=None, use_bf16=True):
    """x: (B, dim_in, T) float32 (PyTorch Conv1d layout). Returns (B, dim_out, T//2)."""
    B, Cin, T = x.shape
    assert Cin == dim_in and T % 2 == 0
    tt = _pick_time_tile(T) if time_tile is None else time_tile
    nt = T // tt
    assert T % tt == 0 and (nt == 1 or tt % 256 == 0)   # keep blocks (8,128)-legal
    th = tt // 2
    has_sconv = (dim_in != dim_out)
    fuse_taps = (3 * Cin <= 128)
    mm_dtype = jnp.bfloat16 if use_bf16 else jnp.float32

    # ---- one-time parameter prep (weight norm + matmul layouts), tiny ----
    w1 = weight_norm_eff(params["v1"], params["g1"])                  # (Cin, Cin, 3)
    w1_t = jnp.transpose(w1, (2, 1, 0))                               # (tap, cin, cout)
    w1_op = (w1_t.reshape(3 * Cin, Cin) if fuse_taps else w1_t).astype(mm_dtype)
    w2_op = weight_norm_eff(params["v2"], params["g2"])[:, :, 0].T.astype(mm_dtype)
    b1 = params["b1"].reshape(1, Cin).astype(jnp.float32)
    b2 = params["b2"].reshape(1, dim_out).astype(jnp.float32)

    halos = _build_halos(x, nt, tt)                                   # (B, nt, 2, Cin)

    in_specs = [
        pl.BlockSpec((1, Cin, tt), lambda b, j: (b, 0, j)),           # x tile, channels-first
        pl.BlockSpec((1, 1, 2, Cin), lambda b, j: (b, j, 0, 0)),      # halo columns
        pl.BlockSpec(w1_op.shape, lambda b, j: (0,) * w1_op.ndim),    # weights: constant maps ->
        pl.BlockSpec((1, Cin), lambda b, j: (0, 0)),                  # fetched once, VMEM-resident
        pl.BlockSpec((Cin, dim_out), lambda b, j: (0, 0)),
        pl.BlockSpec((1, dim_out), lambda b, j: (0, 0)),
    ]
    operands = [x, halos, w1_op, b1, w2_op, b2]
    if has_sconv:
        ws_op = weight_norm_eff(params["vs"], params["gs"])[:, :, 0].T.astype(mm_dtype)
        in_specs.append(pl.BlockSpec((Cin, dim_out), lambda b, j: (0, 0)))
        operands.append(ws_op)

    out = pl.pallas_call(
        _make_res_block_kernel(tt, fuse_taps, has_sconv, mm_dtype),
        out_shape=jax.ShapeDtypeStruct((B, dim_out, T // 2), jnp.float32),
        grid_spec=pltpu.PrefetchScalarGridSpec(
            num_scalar_prefetch=0,
            grid=(B, nt),
            in_specs=in_specs,
            out_specs=pl.BlockSpec((1, dim_out, th), lambda b, j: (b, 0, j)),
            scratch_shapes=[pltpu.VMEM((tt, Cin), jnp.float32)],
        ),
        compiler_params=pltpu.CompilerParams(
            dimension_semantics=("parallel", "parallel"),
            vmem_limit_bytes=48 * 1024 * 1024,
        ),
    )(*operands)
    return out                                                         # (B, dim_out, T//2)


# ---------------------------------------------------------------------------
# Pure-JAX reference (same params / semantics) for correctness checks.
# ---------------------------------------------------------------------------
def res_block_reference(x, params, dim_in, dim_out):
    T = x.shape[-1]
    w1 = weight_norm_eff(params["v1"], params["g1"])    # (Cin, Cin, 3)
    w2 = weight_norm_eff(params["v2"], params["g2"])    # (Cout, Cin, 1)
    b1, b2 = params["b1"], params["b2"]

    if dim_in != dim_out:
        ws = weight_norm_eff(params["vs"], params["gs"])[:, :, 0]
        sc = jnp.einsum("oc,bct->bot", ws, x)
    else:
        sc = x
    sc = 0.5 * (sc[:, :, 0::2] + sc[:, :, 1::2])

    a = jnp.where(x >= 0, x, LRELU_SLOPE * x)
    ap = jnp.pad(a, ((0, 0), (0, 0), (1, 1)))
    y = b1[None, :, None] + sum(
        jnp.einsum("oc,bct->bot", w1[:, :, k], ap[:, :, k:k + T]) for k in range(3))
    y = 0.5 * (y[:, :, 0::2] + y[:, :, 1::2])
    y = jnp.where(y >= 0, y, LRELU_SLOPE * y)
    y = jnp.einsum("oc,bct->bot", w2[:, :, 0], y) + b2[None, :, None]
    return y + sc


def init_params(key, dim_in, dim_out):
    ks = jax.random.split(key, 8)
    p = {
        "v1": 0.3 * jax.random.normal(ks[0], (dim_in, dim_in, 3), jnp.float32),
        "g1": 1.0 + 0.1 * jax.random.normal(ks[1], (dim_in,), jnp.float32),
        "b1": 0.1 * jax.random.normal(ks[2], (dim_in,), jnp.float32),
        "v2": 0.3 * jax.random.normal(ks[3], (dim_out, dim_in, 1), jnp.float32),
        "g2": 1.0 + 0.1 * jax.random.normal(ks[4], (dim_out,), jnp.float32),
        "b2": 0.1 * jax.random.normal(ks[5], (dim_out,), jnp.float32),
    }
    if dim_in != dim_out:
        p["vs"] = 0.3 * jax.random.normal(ks[6], (dim_out, dim_in, 1), jnp.float32)
        p["gs"] = 1.0 + 0.1 * jax.random.normal(ks[7], (dim_out,), jnp.float32)
    return p


if __name__ == "__main__":
    key = jax.random.PRNGKey(0)
    # (dim_in, dim_out, B, T): exercise the s_conv and identity shortcuts, and a
    # time-tiled run (T=512 -> tile 256, two grid steps, halo path).
    configs = [(4, 8, 2, 16), (4, 4, 2, 16), (4, 4, 1, 512)]
    for dim_in, dim_out, B, T in configs:
        kp, kx, key = jax.random.split(key, 3)
        params = init_params(kp, dim_in, dim_out)
        x = jax.random.normal(kx, (B, dim_in, T), jnp.float32)
        ref = jax.block_until_ready(res_block_reference(x, params, dim_in, dim_out))
        # f32 path checked tight, bf16-matmul path checked loose.
        for use_bf16, tol in ((False, 1e-4), (True, 3e-2)):
            out = jax.block_until_ready(
                res_block_forward(x, params, dim_in, dim_out, use_bf16=use_bf16))
            assert out.shape == (B, dim_out, T // 2), out.shape
            np.testing.assert_allclose(np.asarray(out), np.asarray(ref),
                                       rtol=tol, atol=tol)
    print("KERNEL_OK")
</pallas_src>

<mosaic_0001>
module attributes {stable_mosaic.version = 11 : i64} {
  func.func @kernel(%arg0: i32, %arg1: i32, %arg2: memref<1x4x16xf32, #tpu.memory_space<vmem>>, %arg3: memref<1x1x2x4xf32, #tpu.memory_space<vmem>>, %arg4: memref<12x4xf32, #tpu.memory_space<vmem>>, %arg5: memref<1x4xf32, #tpu.memory_space<vmem>>, %arg6: memref<4x8xf32, #tpu.memory_space<vmem>>, %arg7: memref<1x8xf32, #tpu.memory_space<vmem>>, %arg8: memref<4x8xf32, #tpu.memory_space<vmem>>, %arg9: memref<1x8x8xf32, #tpu.memory_space<vmem>>, %arg10: memref<16x4xf32, #tpu.memory_space<vmem>>) attributes {dimension_semantics = [#tpu.dimension_semantics<parallel>, #tpu.dimension_semantics<parallel>], iteration_bounds = array<i64: 2, 1>, scalar_prefetch = 0 : i64, scratch_operands = 1 : i64, tpu.core_type = #tpu.core_type<tc>, window_params = [{transform_indices = @transform_0, window_bounds = array<i64: 1, 4, 16>}, {transform_indices = @transform_1, window_bounds = array<i64: 1, 1, 2, 4>}, {pipeline_mode = #tpu.pipeline_mode<synchronous>, transform_indices = @transform_2, window_bounds = array<i64: 12, 4>}, {pipeline_mode = #tpu.pipeline_mode<synchronous>, transform_indices = @transform_3, window_bounds = array<i64: 1, 4>}, {pipeline_mode = #tpu.pipeline_mode<synchronous>, transform_indices = @transform_4, window_bounds = array<i64: 4, 8>}, {pipeline_mode = #tpu.pipeline_mode<synchronous>, transform_indices = @transform_5, window_bounds = array<i64: 1, 8>}, {pipeline_mode = #tpu.pipeline_mode<synchronous>, transform_indices = @transform_6, window_bounds = array<i64: 4, 8>}, {transform_indices = @transform_7, window_bounds = array<i64: 1, 8, 8>}]} {
    %c0 = arith.constant 0 : index
    %c0_0 = arith.constant 0 : index
    %c0_1 = arith.constant 0 : index
    %0 = vector.load %arg2[%c0, %c0_0, %c0_1] : memref<1x4x16xf32, #tpu.memory_space<vmem>>, vector<1x4x16xf32>
    %1 = vector.shape_cast %0 : vector<1x4x16xf32> to vector<4x16xf32>
    %2 = tpu.transpose %1, [1, 0] : vector<4x16xf32> -> vector<16x4xf32>
    %c0_2 = arith.constant 0 : index
    %c0_3 = arith.constant 0 : index
    %c0_4 = arith.constant 0 : index
    %c0_5 = arith.constant 0 : index
    %3 = vector.load %arg3[%c0_2, %c0_3, %c0_4, %c0_5] : memref<1x1x2x4xf32, #tpu.memory_space<vmem>>, vector<1x1x2x4xf32>
    %4 = vector.shape_cast %3 : vector<1x1x2x4xf32> to vector<2x4xf32>
    %c0_6 = arith.constant 0 : index
    %c0_7 = arith.constant 0 : index
    %5 = vector.load %arg10[%c0_6, %c0_7] : memref<16x4xf32, #tpu.memory_space<vmem>>, vector<16x4xf32>
    tpu.vector_store %arg10[%c0_6, %c0_7], %2 {strides = array<i32>} : memref<16x4xf32, #tpu.memory_space<vmem>>, vector<16x4xf32>,
    %c0_8 = arith.constant 0 : index
    %c0_9 = arith.constant 0 : index
    %6 = tpu.strided_load %arg10[%c0_8, %c0_9] {strides = array<i32: 2, 1>} : memref<16x4xf32, #tpu.memory_space<vmem>>, vector<8x4xf32>
    %c1 = arith.constant 1 : index
    %c0_10 = arith.constant 0 : index
    %7 = tpu.strided_load %arg10[%c1, %c0_10] {strides = array<i32: 2, 1>} : memref<16x4xf32, #tpu.memory_space<vmem>>, vector<8x4xf32>
    %8 = arith.addf %6, %7 : vector<8x4xf32>
    %cst = arith.constant 5.000000e-01 : f32
    %9 = vector.broadcast %cst : f32 to vector<8x4xf32>
    %10 = arith.mulf %9, %8 : vector<8x4xf32>
    %c0_11 = arith.constant 0 : index
    %c0_12 = arith.constant 0 : index
    %11 = vector.load %arg8[%c0_11, %c0_12] : memref<4x8xf32, #tpu.memory_space<vmem>>, vector<4x8xf32>
    %cst_13 = arith.constant dense<0.000000e+00> : vector<8x8xf32>
    %12 = tpu.matmul %10, %11, %cst_13 {dimension_numbers = #tpu.dot_dimension_numbers<[1], [0], [0], [1], [0, 0, 1, 1], [], []>} : vector<8x4xf32>, vector<4x8xf32>, vector<8x8xf32> -> vector<8x8xf32>
    %13 = vector.extract_strided_slice %4 {offsets = [0, 0], sizes = [1, 4], strides = [1, 1]} : vector<2x4xf32> to vector<1x4xf32>
    %cst_14 = arith.constant 0.000000e+00 : f32
    %14 = vector.broadcast %cst_14 : f32 to vector<1x4xf32>
    %15 = arith.cmpf oge, %13, %14 : vector<1x4xf32>
    %cst_15 = arith.constant 2.000000e-01 : f32
    %16 = vector.broadcast %cst_15 : f32 to vector<1x4xf32>
    %17 = arith.mulf %16, %13 : vector<1x4xf32>
    %18 = arith.select %15, %13, %17 : vector<1x4xi1>, vector<1x4xf32>
    %cst_16 = arith.constant 0.000000e+00 : f32
    %19 = vector.broadcast %cst_16 : f32 to vector<16x4xf32>
    %20 = arith.cmpf oge, %2, %19 : vector<16x4xf32>
    %cst_17 = arith.constant 2.000000e-01 : f32
    %21 = vector.broadcast %cst_17 : f32 to vector<16x4xf32>
    %22 = arith.mulf %21, %2 : vector<16x4xf32>
    %23 = arith.select %20, %2, %22 : vector<16x4xi1>, vector<16x4xf32>
    %24 = vector.extract_strided_slice %4 {offsets = [1, 0], sizes = [1, 4], strides = [1, 1]} : vector<2x4xf32> to vector<1x4xf32>
    %cst_18 = arith.constant 0.000000e+00 : f32
    %25 = vector.broadcast %cst_18 : f32 to vector<1x4xf32>
    %26 = arith.cmpf oge, %24, %25 : vector<1x4xf32>
    %cst_19 = arith.constant 2.000000e-01 : f32
    %27 = vector.broadcast %cst_19 : f32 to vector<1x4xf32>
    %28 = arith.mulf %27, %24 : vector<1x4xf32>
    %29 = arith.select %26, %24, %28 : vector<1x4xi1>, vector<1x4xf32>
    %30 = tpu.concatenate %18, %23, %29 in 0 : vector<1x4xf32>, vector<16x4xf32>, vector<1x4xf32> -> vector<18x4xf32>
    %31 = vector.extract_strided_slice %30 {offsets = [0, 0], sizes = [16, 4], strides = [1, 1]} : vector<18x4xf32> to vector<16x4xf32>
    %32 = vector.extract_strided_slice %30 {offsets = [1, 0], sizes = [16, 4], strides = [1, 1]} : vector<18x4xf32> to vector<16x4xf32>
    %33 = vector.extract_strided_slice %30 {offsets = [2, 0], sizes = [16, 4], strides = [1, 1]} : vector<18x4xf32> to vector<16x4xf32>
    %34 = tpu.concatenate %31, %32, %33 in 1 : vector<16x4xf32>, vector<16x4xf32>, vector<16x4xf32> -> vector<16x12xf32>
    %c0_20 = arith.constant 0 : index
    %c0_21 = arith.constant 0 : index
    %35 = vector.load %arg4[%c0_20, %c0_21] : memref<12x4xf32, #tpu.memory_space<vmem>>, vector<12x4xf32>
    %cst_22 = arith.constant dense<0.000000e+00> : vector<16x4xf32>
    %36 = tpu.matmul %34, %35, %cst_22 {dimension_numbers = #tpu.dot_dimension_numbers<[1], [0], [0], [1], [0, 0, 1, 1], [], []>} : vector<16x12xf32>, vector<12x4xf32>, vector<16x4xf32> -> vector<16x4xf32>
    %c0_23 = arith.constant 0 : index
    %c0_24 = arith.constant 0 : index
    %37 = vector.load %arg5[%c0_23, %c0_24] : memref<1x4xf32, #tpu.memory_space<vmem>>, vector<1x4xf32>
    %38 = vector.broadcast %37 : vector<1x4xf32> to vector<16x4xf32>
    %39 = arith.addf %36, %38 : vector<16x4xf32>
    %c0_25 = arith.constant 0 : index
    %c0_26 = arith.constant 0 : index
    %40 = vector.load %arg10[%c0_25, %c0_26] : memref<16x4xf32, #tpu.memory_space<vmem>>, vector<16x4xf32>
    tpu.vector_store %arg10[%c0_25, %c0_26], %39 {strides = array<i32>} : memref<16x4xf32, #tpu.memory_space<vmem>>, vector<16x4xf32>,
    %c0_27 = arith.constant 0 : index
    %c0_28 = arith.constant 0 : index
    %41 = tpu.strided_load %arg10[%c0_27, %c0_28] {strides = array<i32: 2, 1>} : memref<16x4xf32, #tpu.memory_space<vmem>>, vector<8x4xf32>
    %c1_29 = arith.constant 1 : index
    %c0_30 = arith.constant 0 : index
    %42 = tpu.strided_load %arg10[%c1_29, %c0_30] {strides = array<i32: 2, 1>} : memref<16x4xf32, #tpu.memory_space<vmem>>, vector<8x4xf32>
    %43 = arith.addf %41, %42 : vector<8x4xf32>
    %cst_31 = arith.constant 5.000000e-01 : f32
    %44 = vector.broadcast %cst_31 : f32 to vector<8x4xf32>
    %45 = arith.mulf %44, %43 : vector<8x4xf32>
    %cst_32 = arith.constant 0.000000e+00 : f32
    %46 = vector.broadcast %cst_32 : f32 to vector<8x4xf32>
    %47 = arith.cmpf oge, %45, %46 : vector<8x4xf32>
    %cst_33 = arith.constant 2.000000e-01 : f32
    %48 = vector.broadcast %cst_33 : f32 to vector<8x4xf32>
    %49 = arith.mulf %48, %45 : vector<8x4xf32>
    %50 = arith.select %47, %45, %49 : vector<8x4xi1>, vector<8x4xf32>
    %c0_34 = arith.constant 0 : index
    %c0_35 = arith.constant 0 : index
    %51 = vector.load %arg6[%c0_34, %c0_35] : memref<4x8xf32, #tpu.memory_space<vmem>>, vector<4x8xf32>
    %cst_36 = arith.constant dense<0.000000e+00> : vector<8x8xf32>
    %52 = tpu.matmul %50, %51, %cst_36 {dimension_numbers = #tpu.dot_dimension_numbers<[1], [0], [0], [1], [0, 0, 1, 1], [], []>} : vector<8x4xf32>, vector<4x8xf32>, vector<8x8xf32> -> vector<8x8xf32>
    %c0_37 = arith.constant 0 : index
    %c0_38 = arith.constant 0 : index
    %53 = vector.load %arg7[%c0_37, %c0_38] : memref<1x8xf32, #tpu.memory_space<vmem>>, vector<1x8xf32>
    %54 = vector.broadcast %53 : vector<1x8xf32> to vector<8x8xf32>
    %55 = arith.addf %52, %54 : vector<8x8xf32>
    %56 = arith.addf %55, %12 : vector<8x8xf32>
    %57 = tpu.transpose %56, [1, 0] : vector<8x8xf32> -> vector<8x8xf32>
    %c0_39 = arith.constant 0 : index
    %c0_40 = arith.constant 0 : index
    %c0_41 = arith.constant 0 : index
    %58 = vector.load %arg9[%c0_39, %c0_40, %c0_41] : memref<1x8x8xf32, #tpu.memory_space<vmem>>, vector<1x8x8xf32>
    %59 = vector.shape_cast %58 : vector<1x8x8xf32> to vector<8x8xf32>
    %60 = vector.shape_cast %57 : vector<8x8xf32> to vector<1x8x8xf32>
    tpu.vector_store %arg9[%c0_39, %c0_40, %c0_41], %60 {strides = array<i32>} : memref<1x8x8xf32, #tpu.memory_space<vmem>>, vector<1x8x8xf32>,
    return
  }
  func.func @transform_0(%arg0: i32, %arg1: i32) -> (i32, i32, i32) {
    %c0_i32 = arith.constant 0 : i32
    %c0_i32_0 = arith.constant 0 : i32
    return %arg0, %c0_i32, %arg1 : i32, i32, i32
  }
  func.func @transform_1(%arg0: i32, %arg1: i32) -> (i32, i32, i32, i32) {
    %c0_i32 = arith.constant 0 : i32
    %c0_i32_0 = arith.constant 0 : i32
    %c0_i32_1 = arith.constant 0 : i32
    return %arg0, %arg1, %c0_i32, %c0_i32_0 : i32, i32, i32, i32
  }
  func.func @transform_2(%arg0: i32, %arg1: i32) -> (i32, i32) {
    %c0_i32 = arith.constant 0 : i32
    %c0_i32_0 = arith.constant 0 : i32
    %c0_i32_1 = arith.constant 0 : i32
    return %c0_i32, %c0_i32_0 : i32, i32
  }
  func.func @transform_3(%arg0: i32, %arg1: i32) -> (i32, i32) {
    %c0_i32 = arith.constant 0 : i32
    %c0_i32_0 = arith.constant 0 : i32
    %c0_i32_1 = arith.constant 0 : i32
    return %c0_i32, %c0_i32_0 : i32, i32
  }
  func.func @transform_4(%arg0: i32, %arg1: i32) -> (i32, i32) {
    %c0_i32 = arith.constant 0 : i32
    %c0_i32_0 = arith.constant 0 : i32
    %c0_i32_1 = arith.constant 0 : i32
    return %c0_i32, %c0_i32_0 : i32, i32
  }
  func.func @transform_5(%arg0: i32, %arg1: i32) -> (i32, i32) {
    %c0_i32 = arith.constant 0 : i32
    %c0_i32_0 = arith.constant 0 : i32
    %c0_i32_1 = arith.constant 0 : i32
    return %c0_i32, %c0_i32_0 : i32, i32
  }
  func.func @transform_6(%arg0: i32, %arg1: i32) -> (i32, i32) {
    %c0_i32 = arith.constant 0 : i32
    %c0_i32_0 = arith.constant 0 : i32
    %c0_i32_1 = arith.constant 0 : i32
    return %c0_i32, %c0_i32_0 : i32, i32
  }
  func.func @transform_7(%arg0: i32, %arg1: i32) -> (i32, i32, i32) {
    %c0_i32 = arith.constant 0 : i32
    %c0_i32_0 = arith.constant 0 : i32
    return %arg0, %c0_i32, %arg1 : i32, i32, i32
  }
}

</mosaic_0001>

<bundles_post_ra>
// kernel: tpu_custom_call.1
= control target key start
LH: loop header
LB: loop body
LE: loop exit
PB: predicated region body
PF: predicated region fallthrough
CT: control target
= control target key end

     0   :  { %12 = vsyncpa [#allocation4], 0  ;;  %s1210_s0 = inlined_call_operand.vmem [shape: f32[2,4,16], index: 0, kind: input, shape index: {}]   ;;  %s1211_s1 = inlined_call_operand.vmem [shape: f32[2,1,2,4], index: 1, kind: input, shape index: {}]   ;;  %s1212_s2 = inlined_call_operand.vmem [shape: f32[12,4], index: 2, kind: input, shape index: {}]   ;;  %s1213_s3 = inlined_call_operand.vmem [shape: f32[1,4], index: 3, kind: input, shape index: {}]   ;;  %s1214_s4 = inlined_call_operand.vmem [shape: f32[4,8], index: 4, kind: input, shape index: {}]   ;;  %s1215_s5 = inlined_call_operand.vmem [shape: f32[1,8], index: 5, kind: input, shape index: {}]   ;;  %s1216_s6 = inlined_call_operand.vmem [shape: f32[4,8], index: 6, kind: input, shape index: {}]   ;;  %s1217_s7 = inlined_call_operand.hbm [shape: f32[2,8,8], index: 7, kind: output, shape index: {}]  }
   0x1   :  { %14 = vsyncpa [#allocation4 + $0x1], 0  ;;  %s1061_s24 = smov 0   ;;  %s1063_s25 = smov 0  }
   0x2   :  { %s1065_s26 = smov 0   ;;  %s1067_s27 = smov 0  }
   0x3   :  { %s1069_s28 = smov 0   ;;  %s1071_s29 = smov 0  }
   0x4 LB: > { %s820_s30 = sadd.s32 4294967295, %s1013_s29   ;;  %s821_s8 = sadd.s32 4294967294, %s1013_s29   ;;  %s1013_s29 = sphi %s1071_s29, %s20_s29   ;;  %s1009_s28 = sphi %s1069_s28, %s1224_s28   ;;  %s1005_s27 = sphi %s1067_s27, %s1223_s27   ;;  %s1001_s26 = sphi %s1065_s26, %s1222_s26   ;;  %s997_s25 = sphi %s1063_s25, %s1221_s25   ;;  %s993_s24 = sphi %s1061_s24, %s1220_s24  }
   0x5   : > { %s32_s9 = sadd.s32 1, %s1009_s28  ;;  %s202_s10 = sadd.s32 1, %s1001_s26 }
   0x6   : > { %p34_p0 = scmp.ge.s32.totalorder %s32_s9, 2  ;;  %p212_p1 = scmp.ne.s32.totalorder %s1001_s26, %s997_s25 }
   0x7   : > { %p213_p2 = scmp.eq.s32.totalorder %s820_s30, 1  ;;  %p218_p3 = scmp.ne.s32.totalorder %s997_s25, %s993_s24 }
   0x8   : > { %s1226_s9 = smov (%p34_p0, %s32_s9), 0  ;;  %p219_p5 = scmp.eq.s32.totalorder %s821_s8, 1 }
   0x9   : > { %p1101_p4 = por %p213_p2, %p212_p1  ;;  %s197_s12 = ssub.s32 %s1009_s28, %s1226_s9 }
   0xa   : > { %p824_p6 = scmp.ge.s32.totalorder %s1013_s29, 1  ;;  %p200_p7 = scmp.eq.s32.totalorder %s197_s12, 0 }
   0xb   : > { %p1108_p8 = por %p219_p5, %p218_p3  ;;  %p272_p9 = scmp.lt.s32.totalorder %s1013_s29, 3 }
   0xc   : > { %s1114_s14 = scalar_select %p200_p7, %s1001_s26, %s202_s10  }
   0xd   : > { %p273_p10 = pnand %p824_p6, %p272_p9 }
   0xe   : > { %p313_p11 = scmp.lt.s32.totalorder (!%p273_p10), %s1005_s27, 1  ;;  %v369_v1 = vld [vmem:[%s1216_s6] sm:$0xf] (!%p273_p10)  ;;  %vm373_vm0 = vcmask (!%p273_p10), 1043456   ;;  %v1015_v2 = vmov (!%p273_p10), 0.0   ;;  %vm1016_vm1 = vmmov (!%p273_p10), 0  }
   0xf   : > { %276 = sbr.rel (%p273_p10) target bundleno = 880 (0x370), region = 48  ;;  %849 = vmatprep.subr.mxu0 (!%p273_p10), %v1015_v2  ;;  %851 = vmatprep.mubr.msk.f32.mxu0 (!%p273_p10), %vm1016_vm1, %v1015_v2  ;;  %vm361_vm2 = vcmask (!%p273_p10), 31744   ;;  %v498_v11 = vld [vmem:[%s1212_s2] sm:$0xff] (!%p273_p10)  ;;  %v499_v12 = vld [vmem:[%s1212_s2 + $0x8] sm:$0xf] (!%p273_p10)  ;;  %vm458_vm6 = vcmask (!%p273_p10), 1040384  }
  0x10   : > { %850 = vmatpush3.msk.msra.mxu0 (!%p273_p10), %vm373_vm0, %v369_v1  ;;  %v866_v14 = vpack.c.bf16 (!%p273_p10), %v499_v12, %v498_v11  ;;  %vm1017_vm7 = vmmov (!%p273_p10), 1   ;;  %vm469_vm9 = vcmask (!%p273_p10), 1046528   ;;  %s1018_s17 = smov (!%p273_p10), 4   ;;  %vm481_vm10 = vcmask (!%p273_p10), 1045504   ;;  %s1019_s18 = smov (!%p273_p10), 8  }
  0x11   : > { %861 = vmatprep.subr.mxu0 (!%p273_p10), %v1015_v2  ;;  %vm867_vm8 = vmpackc.low (!%p273_p10), %vm373_vm0, %vm1017_vm7  ;;  %vm495_vm11 = vcmask (!%p273_p10), 64512   ;;  %vm507_vm12 = vcmask (!%p273_p10), 97280   ;;  %v601_v42 = vld [vmem:[%s1214_s4] sm:$0xf] (!%p273_p10)  ;;  %s838_s12 = sshll.u32 (!%p273_p10), %s1005_s27, 7 }
  0x12   : > { %868 = vmatprep.subr.msk.bf16.mxu1 (!%p273_p10), %vm867_vm8, %v866_v14  ;;  %v830_v43 = vld [vmem:[%s1213_s3] ss:$0 sm:$0xff] (!%p273_p10) }
  0x13   : > { %871 = vmatpush3.bf16.msk.msra.mxu1 (!%p273_p10), %vm867_vm8, %v866_v14  ;;  %v834_v54 = vld [vmem:[%s1215_s5] ss:$0 sm:$0xff] (!%p273_p10) }
  0x16   : > { %s314_s15 = scalar_select %p313_p11, %s1005_s27, 1 }
  0x17   : > { %s1020_s27 = smov [#allocation3]  }
  0x18   : > { %s826_s16 = sshll.u32 %s314_s15, 2  ;;  %s827_s22 = sshll.u32 %s314_s15, 1 }
  0x19   : > { %s319_s19 = scalar_lea.vmem %s1210_s0, %s826_s16  ;;  %s326_s8 = scalar_lea.vmem %s1211_s1, %s827_s22 }
  0x1a   : > { %v327_v0 = vld [vmem:[%s319_s19] sm:$0xf]  ;;  %s1162_s19 = scalar_lea.hbm %s1217_s7, %s838_s12  ;;  %s939_s22 = sshll.u32 %s1020_s27, 4  ;;  %s940_s22 = int_to_ptr.vmem [resolvable:$false] %s939_s22 }
  0x1b   : > { %328 = vxpose.xlu0.b32.start.end [1/1] (short) (narrow) %v327_v0, 16  ;;  %v360_v3 = vld [vmem:[%s326_s8] sm:$0x3]  ;;  %s310_s8 = sand.u32 1, %s997_s25   ;;  %s941_s23 = scalar_lea.vmem %s940_s22, 256 }
  0x1c   : > { %v448_v4 = vmul.f32 0.2, %v360_v3  ;;  %vm447_vm3 = vcmp.ge.f32.partialorder %v360_v3, 0.0  ;;  %s825_s10 = sshll.u32 %s310_s8, 3  ;;  %s720_s20 = scalar_lea.sflag [#allocation4], %s310_s8 }
  0x1d   : > { %s312_s15 = scalar_lea.vmem [#allocation3], %s825_s10 }
  0x1e   : > { %v449_v8 = vsel %vm447_vm3, %v360_v3, %v448_v4  ;;  %s734_s16 = sshll.u32 %s312_s15, 4  ;;  %s1164_s16 = int_to_ptr.vmem [resolvable:$true] %s734_s16 }
  0x1f   : > { %s935_s21 = scalar_lea.vmem %s1164_s16, 128  ;;  %p942_p1 = scmp.lt.s32.totalorder %s1164_s16, %s940_s22 }
  0x20   : > { %p936_p12 = scmp.ne.s32.totalorder %s1164_s16, %s935_s21  ;;  %p943_p2 = scmp.lt.s32.totalorder %s941_s23, %s935_s21 }
  0x22   : > { %p937_p13 = pnand %p936_p12, %p1101_p4  ;;  %p944_p3 = por %p943_p2, %p942_p1 }
  0x24   : > { %p938_p0 = pneg %p937_p13 }
  0x26   : > { %p945_p5 = pnand %p944_p3, %p938_p0 }
  0x9b   : > { %v344_v5 = vpop.trf.xlu0 }
  0x9c   : > { %362 = vst.msk [vmem:[#allocation2] sm:$0xff] %vm361_vm2, %v344_v5  ;;  %vm450_vm4 = vcmp.ge.f32.partialorder %v344_v5, 0.0  ;;  %v452_v6 = vmul.f32 0.2, %v344_v5 }
  0x9e   : > { %v454_v7 = vsel %vm450_vm4, %v344_v5, %v452_v6 }
  0x9f   : > { %v459_v9 = vrot.slane %v454_v7, 7  ;;  %v345_v10 = vpop.trf.xlu0 }
  0xa0   : > { %363 = vst.msk [vmem:[#allocation2 + $0x8] sm:$0xff] %vm361_vm2, %v345_v10  ;;  %vm451_vm5 = vcmp.ge.f32.partialorder %v345_v10, 0.0  ;;  %v453_v13 = vmul.f32 0.2, %v345_v10 }
  0xa1   : > { %v465_v17 = vsel %vm458_vm6, %v449_v8, %v459_v9 }
  0xa2   : > { %v455_v15 = vsel %vm451_vm5, %v345_v10, %v453_v13  ;;  %v470_v22 = vrot.slane %v465_v17, 1  ;;  %v482_v30 = vrot.slane %v465_v17, 2 }
  0xa3   : > { %v460_v16 = vrot.slane %v455_v15, 7 }
  0xa5   : > { %v461_v18 = vsel %vm458_vm6, %v459_v9, %v460_v16  ;;  %v466_v19 = vsel %vm458_vm6, %v460_v16, %v449_v8 }
  0xa6   : > { %v471_v20 = vrot.slane %v461_v18, 1  ;;  %v473_v21 = vrot.slane %v466_v19, 1  ;;  %v483_v28 = vrot.slane %v461_v18, 2  ;;  %v485_v32 = vrot.slane %v466_v19, 2 }
  0xa7   : > { %v364_v23 = vld [vmem:[#allocation2] ss:$2 sm:$0xff]  ;;  %v366_v24 = vld [vmem:[#allocation2 + $0x1] ss:$2 sm:$0xff] }
  0xa8   : > { %v474_v25 = vsel %vm469_vm9, %v471_v20, %v473_v21  ;;  %v472_v26 = vsel %vm469_vm9, %v470_v22, %v471_v20  ;;  %v367_v27 = vadd.f32 %v366_v24, %v364_v23  ;;  %v484_v31 = vsel %vm481_vm10, %v482_v30, %v483_v28 }
  0xa9   : > { %477 = vrot.lane.b32.xlu1 %v474_v25, %s1018_s17  ;;  %475 = vrot.lane.b32.xlu0 %v472_v26, %s1018_s17  ;;  %v486_v33 = vsel %vm481_vm10, %v483_v28, %v485_v32 }
  0xaa   : > { %v368_v29 = vmul.f32 0.5, %v367_v27 }
  0xac   : > { %852 = vmatmul.mubr.msk.f32.vlgmr.msra.gmra.mrb[0].mxu0 %vm361_vm2, %v368_v29 }
  0xad   : > { %487 = vrot.lane.b32.xlu1 %v484_v31, %s1019_s18  ;;  %863 = vmatprep.mubr.msk.f32.mxu0 %vm1016_vm1, %v1015_v2 }
  0xae   : > { %862 = vmatpush3.msk.msra.mxu0 %vm373_vm0, %v601_v42 }
  0xb1   : > { %489 = vrot.lane.b32.xlu1 %v486_v33, %s1019_s18 }
 0x11b   : > { %v478_v34 = vpop.permute.xlu1 %477  ;;  %v476_v35 = vpop.permute.xlu0 %475 }
 0x11c   : > { %v493_v36 = vsel %vm361_vm2, %v465_v17, %v476_v35  ;;  %v494_v39 = vsel %vm361_vm2, %v461_v18, %v478_v34 }
 0x11f   : > { %v488_v37 = vpop.permute.xlu1 %487 }
 0x120   : > { %v496_v38 = vsel %vm495_vm11, %v493_v36, %v488_v37 }
 0x121   : > { %858 = vmatprep.mubr.msk.f32.mxu1 %vm507_vm12, %v496_v38 }
 0x123   : > { %v490_v40 = vpop.permute.xlu1 %489 }
 0x124   : > { %v497_v41 = vsel %vm495_vm11, %v494_v39, %v490_v40 }
 0x125   : > { %859 = vmatmul.mubr.msk.f32.vlgmr.msra.gmra.mrb[0].mxu1 %vm507_vm12, %v497_v41 }
 0x1f8   : > { %v860_v44 = vpop.f32.mrb[0].mxu1 }
 0x1f9   : > { %v589_v45 = vadd.f32 %v860_v44, %v830_v43  ;;  %v583_v46 = vpop.f32.mrb[1].mxu1 }
 0x1fa   : > { %v584_v47 = vadd.f32 %v830_v43, %v583_v46 }
 0x1fb   : > { %593 = vst.msk [vmem:[#allocation2 + $0x8] sm:$0xff] %vm361_vm2, %v589_v45 }
 0x1fc   : > { %592 = vst.msk [vmem:[#allocation2] sm:$0xff] %vm361_vm2, %v584_v47 }
 0x203   : > { %v594_v48 = vld [vmem:[#allocation2] ss:$2 sm:$0xff]  ;;  %v595_v49 = vld [vmem:[#allocation2 + $0x1] ss:$2 sm:$0xff] }
 0x204   : > { %v596_v50 = vadd.f32 %v595_v49, %v594_v48 }
 0x206   : > { %v597_v51 = vmul.f32 0.5, %v596_v50 }
 0x208   : > { %vm598_vm13 = vcmp.ge.f32.partialorder %v597_v51, 0.0  ;;  %v599_v52 = vmul.f32 0.2, %v597_v51 }
 0x20a   : > { %v600_v53 = vsel %vm598_vm13, %v597_v51, %v599_v52 }
 0x20b   : > { %864 = vmatmul.mubr.msk.f32.vlgmr.msra.gmra.mrb[0].mxu0 %vm361_vm2, %v600_v53 }
 0x2de   : > { %v681_v55 = vpop.f32.mrb[0].mxu0 }
 0x2df   : > { %v682_v56 = vadd.f32 %v834_v54, %v681_v55  ;;  %v865_v57 = vpop.f32.mrb[1].mxu0 }
 0x2e1   : > { %686 = vxpose.xlu1.b32.start.end [1/1] (short) (narrow) %v682_v56, 8 }
 0x361   : > { %v702_v58 = vpop.trf.xlu1 }
 0x362   : > { %718 = vst.msk [vmem:[%s312_s15] sm:$0xff] %vm495_vm11, %v702_v58 }
 0x363   : > { %948 = shalt.err (!%p945_p5)
}
 0x364   : > { %s949_s30 = scalar_lea.hbm %s1162_s19, 128  ;;  %s953_s12 = scalar_lea.hbm %s1217_s7, 256 }
 0x365   : > { %p950_p6 = scmp.ne.s32.totalorder %s1162_s19, %s949_s30  ;;  %p954_p10 = scmp.lt.u32.totalorder %s1162_s19, %s1217_s7 }
 0x366   : > { %p955_p11 = scmp.lt.u32.totalorder %s953_s12, %s949_s30  ;;  %p957_p13 = scmp.lt.u32.totalorder %s949_s30, %s1162_s19 }
 0x367   : > { %p951_p7 = pnand %p950_p6, %p1101_p4 }
 0x368   : > { %p956_p12 = por %p955_p11, %p954_p10 }
 0x369   : > { %p952_p9 = pneg %p951_p7 }
 0x36a   : > { %p958_p0 = por %p957_p13, %p956_p12 }
 0x36c   : > { %p959_p1 = pnand %p958_p0, %p952_p9 }
 0x36e   : > { %962 = shalt.err (!%p959_p1)
}
 0x36f   : > { %875 = dma.vmem_to_hbm [thread:$0]  (%p1101_p4), %s1164_s16, 128, %s1162_s19, %s720_s20  }
 0x370 PF: > { %p881_p2 = scmp.ge.s32.totalorder %s1013_s29, 2  ;;  %s746_s18 = sand.u32 1, %s993_s24  }
 0x371   : > { %s747_s21 = scalar_lea.sflag [#allocation4], %s746_s18 }
 0x372   : > { %p878_p3 = pnand %p881_p2, %p1108_p8 }
 0x374   : > { %988 = dma.done.wait (!%p878_p3), %s747_s21, 128  }
 0x375   : > { %990 = vsyncadd (!%p878_p3), %s747_s21, 4294967168  ;;  %s20_s29 = sadd.s32 1, %s1013_s29   ;;  %s1220_s24 = smov %s997_s25 }
 0x376   : > { %p17_p5 = scmp.ge.s32.totalorder %s20_s29, 4   ;;  %s1221_s25 = smov %s1001_s26 }
 0x377   : > { %s1222_s26 = smov %s1114_s14  ;;  %s1223_s27 = smov %s1009_s28 }
 0x378   : > { %s1224_s28 = smov %s1226_s9  ;;  %19 = sbr.rel (!%p17_p5) target bundleno = 4 (0x4), region = 87 }
 0x37f   :  { %752 = vsyncpa [#allocation4], 1 }
 0x380   :  { %754 = vsyncpa [#allocation4 + $0x1], 1 }

</bundles_post_ra>
